<compile_context>
chip_gen: v6e
topology: v6e:2x2x1
jax: 0.10.0
libtpu: 0.0.40
codegen_flags: <defaults>
</compile_context>

<pallas_src>
import functools

import numpy as np
import jax
import jax.numpy as jnp
from jax.experimental import pallas as pl
from jax.experimental.pallas import tpu as pltpu


def _round_up(x, m):
    return ((x + m - 1) // m) * m


# ----------------------------- Pallas kernel --------------------------------

def _st_psd_kernel(off_ref, x_ref, basis_ref, o_ref, win_ref, *,
                   K, dt, T_pad, n_band, sin_off, tile_r, R, detrend):
    """One grid step = `tile_r` rows of x  ->  tile_r*K normalized band PSDs.

    off_ref:   SMEM [R*K] int32          window start offsets (scalar-prefetched)
    x_ref:     VMEM [tile_r, T_pad] f32  lane-padded time rows
    basis_ref: VMEM [dt, W] f32          cos at [:, :n_band], -sin at [:, sin_off:sin_off+n_band]
    o_ref:     VMEM [tile_r*K, n_band]   output block
    win_ref:   VMEM [tile_r*K, dt]       gathered-window scratch
    """
    base_row = pl.program_id(0) * tile_r

    def gather_row(r_local):
        # Clamp so ragged final tiles never index offsets out of bounds; those rows'
        # outputs land outside the output array and are dropped by the masked block store.
        g_row = jnp.minimum(base_row + r_local, R - 1)
        row = x_ref[pl.ds(r_local, 1), :]                        # [1, T_pad]
        for k in range(K):                                       # K is small & static
            off = off_ref[g_row * K + k]
            # roll(row, -off) brings x[off + n] to lane n (dynamic rotate on the XLU).
            shift = jnp.where(off == 0, 0, T_pad - off)
            w = pltpu.roll(row, shift, axis=1)
            win_ref[pl.ds(r_local * K + k, 1), :] = w[:, :dt]
        # TODO(synk): a per-window pltpu.make_async_copy with a dynamic element start is
        #             an alternative gather path if dynamic rotates ever become limiting.

    if tile_r <= 8:                                              # tiny tile: static unroll
        for r in range(tile_r):
            gather_row(r)
    else:
        def body(r, carry):
            gather_row(r)
            return carry
        jax.lax.fori_loop(0, tile_r, body, 0)

    w = win_ref[...]                                             # [tile_r*K, dt]
    if detrend:
        # Only needed when the DC bin is inside the band; for bins k >= 1 the basis
        # columns sum to exactly zero, so mean subtraction cannot change the result.
        w = w - jnp.mean(w, axis=-1, keepdims=True)

    # One MXU matmul against the packed cos/sin band basis (f32 on purpose, see header).
    y = jnp.dot(w, basis_ref[...], preferred_element_type=jnp.float32)
    re = y[:, :n_band]
    im = y[:, sin_off:sin_off + n_band]
    p = re * re + im * im                                        # band power

    s = jnp.sum(p, axis=-1, keepdims=True)
    inv = pl.reciprocal(s, approx=True)                          # EUP slot
    inv = inv * (2.0 - s * inv)                                  # one Newton step -> f32 accuracy
    o_ref[...] = (p * inv).astype(o_ref.dtype)


# ----------------------------- Module wrapper --------------------------------

class STSamplingPallas:
    TILE_R_CAP = 1024            # rows per grid step, upper bound
    VMEM_BUDGET = 24 * 1024 * 1024   # conservative across v5e/v6e/v7x (v7x: 64 MiB phys)

    def __init__(self, delta_t, K, Fs, high_pass, low_pass):
        self.delta_t = int(delta_t)
        self.K = int(K)
        self.Fs = float(Fs)
        self.high_pass = float(high_pass)
        self.low_pass = float(low_pass)

        # Static frequency-band selection (matches CalculateNormPSD):
        # freqs = linspace(0, Fs/2, delta_t//2 + 1)
        n_freq = self.delta_t // 2 + 1
        freqs = np.linspace(0.0, self.Fs / 2.0, n_freq)
        mask = (freqs >= self.high_pass / 60.0) & (freqs <= self.low_pass / 60.0)
        self.band_idx = np.nonzero(mask)[0]
        assert self.band_idx.size > 0, "empty frequency band"
        self.n_band = int(self.band_idx.size)

        # Detrend is only required if the DC bin (k=0) is in the band; for k>=1 the basis
        # columns sum to exactly zero so the mean subtraction cannot change the result.
        self.need_detrend = bool(self.band_idx[0] == 0)

        # Packed basis layout: cos at lanes [0:n_band], -sin at [sin_off:sin_off+n_band].
        # Single 128-lane slab when it fits (one MXU N-pass even on v5e's 128-wide MXU).
        if 2 * self.n_band <= 128:
            self.sin_off = 64
            W = 128
        else:
            self.sin_off = _round_up(self.n_band, 128)
            W = 2 * self.sin_off

        n = np.arange(self.delta_t, dtype=np.float64)[:, None]        # [dt, 1]
        k = self.band_idx.astype(np.float64)[None, :]                 # [1, n_band]
        ang = 2.0 * np.pi * n * k / self.delta_t
        basis = np.zeros((self.delta_t, W), dtype=np.float64)
        basis[:, :self.n_band] = np.cos(ang) / self.delta_t           # rfft norm='forward'
        basis[:, self.sin_off:self.sin_off + self.n_band] = -np.sin(ang) / self.delta_t
        self.basis = jnp.asarray(basis, dtype=jnp.float32)

    def _pick_tile_r(self, R, T_pad):
        if R <= 8:
            return R
        W = self.basis.shape[1]
        # Rough VMEM bytes per row: double-buffered x block + window scratch + y temp
        # + double-buffered output block.
        per_row = (2 * T_pad * 4
                   + self.K * self.delta_t * 4
                   + self.K * W * 4
                   + 2 * self.K * self.n_band * 4)
        cap = max(8, (self.VMEM_BUDGET // per_row) // 8 * 8)
        # Aim for >= 2 grid steps so the "parallel" axis can shard across v7x's 2 TCs.
        target = _round_up((R + 1) // 2, 8)
        return int(min(target, cap, self.TILE_R_CAP))

    def __call__(self, x, key):
        # x: [B, C, T_total] float32
        B, C, T_total = x.shape
        dt, K = self.delta_t, self.K
        assert T_total >= dt, "clip shorter than delta_t"
        R = B * C

        # Deterministic random offsets, one per (b, c, k) sample (mirrors torch.randint).
        offsets = jax.random.randint(key, (B, C, K), 0, T_total - dt + 1,
                                     dtype=jnp.int32)
        off_flat = offsets.reshape(R * K)                              # 1-D -> cheap SMEM

        # Pad the time axis up to a lane multiple so in-kernel dynamic rotates stay
        # aligned (x is the small array; the windows never touch HBM anymore).
        T_pad = _round_up(T_total, 128)
        x2 = x.reshape(R, T_total).astype(jnp.float32)
        if T_pad != T_total:
            x2 = jnp.pad(x2, ((0, 0), (0, T_pad - T_total)))

        tile_r = self._pick_tile_r(R, T_pad)
        num_tiles = pl.cdiv(R, tile_r)
        tile_s = tile_r * K

        kernel = functools.partial(
            _st_psd_kernel, K=K, dt=dt, T_pad=T_pad, n_band=self.n_band,
            sin_off=self.sin_off, tile_r=tile_r, R=R, detrend=self.need_detrend)

        psd = pl.pallas_call(
            kernel,
            out_shape=jax.ShapeDtypeStruct((R * K, self.n_band), jnp.float32),
            grid_spec=pltpu.PrefetchScalarGridSpec(
                num_scalar_prefetch=1,
                grid=(num_tiles,),
                in_specs=[
                    pl.BlockSpec((tile_r, T_pad), lambda i, off: (i, 0)),   # x row tile
                    pl.BlockSpec((dt, self.basis.shape[1]),
                                 lambda i, off: (0, 0)),                    # basis, resident
                ],
                out_specs=pl.BlockSpec((tile_s, self.n_band), lambda i, off: (i, 0)),
                scratch_shapes=[pltpu.VMEM((tile_s, dt), jnp.float32)],
            ),
            compiler_params=pltpu.CompilerParams(
                dimension_semantics=("parallel",),
                vmem_limit_bytes=32 * 1024 * 1024,
            ),
        )(off_flat, x2, self.basis)

        # [R*K, n_band] -> [B, C*K, n_band]; ordering matches the PyTorch nested lists.
        return psd.reshape(B, C * K, self.n_band), offsets


# ----------------------------- Reference (pure JAX) --------------------------

def _reference(x, offsets, delta_t, band_idx):
    B, C, _ = x.shape
    K = offsets.shape[-1]
    idx = offsets[..., None] + jnp.arange(delta_t)
    win = jnp.take_along_axis(x[:, :, None, :], idx, axis=-1)          # [B,C,K,dt]
    win = win - jnp.mean(win, axis=-1, keepdims=True)
    X = jnp.fft.rfft(win, axis=-1) / delta_t                           # norm='forward'
    p = X.real ** 2 + X.imag ** 2
    p = p[..., band_idx]
    p = p / jnp.sum(p, axis=-1, keepdims=True)
    return p.reshape(B, C * K, -1).astype(jnp.float32)


# ----------------------------- Main ------------------------------------------

if __name__ == "__main__":
    Fs, high_pass, low_pass = 30.0, 40.0, 250.0
    configs = [
        # (B, C, T_total, delta_t, K)
        (2, 3, 64, 32, 4),     # single tile, statically unrolled row loop
        (2, 10, 200, 64, 3),   # two row tiles (ragged last tile), fori_loop path
    ]

    key = jax.random.PRNGKey(0)
    for (B, C, T, dt, K) in configs:
        key, k_data, k_off = jax.random.split(key, 3)
        x = jax.random.normal(k_data, (B, C, T), dtype=jnp.float32)

        module = STSamplingPallas(dt, K, Fs, high_pass, low_pass)
        samples, offsets = module(x, k_off)
        samples = jax.block_until_ready(samples)

        ref = _reference(x, offsets, dt, module.band_idx)
        np.testing.assert_allclose(np.asarray(samples), np.asarray(ref),
                                   rtol=5e-4, atol=2e-5)

    print("KERNEL_OK")
</pallas_src>

<mosaic_0001>
module attributes {stable_mosaic.version = 11 : i64} {
  func.func @_st_psd_kernel(%arg0: i32, %arg1: memref<24xi32, #tpu.memory_space<smem>>, %arg2: memref<6x128xf32, #tpu.memory_space<vmem>>, %arg3: memref<32x128xf32, #tpu.memory_space<vmem>>, %arg4: memref<24x4xf32, #tpu.memory_space<vmem>>, %arg5: memref<24x32xf32, #tpu.memory_space<vmem>>) attributes {dimension_semantics = [#tpu.dimension_semantics<parallel>], iteration_bounds = array<i64: 1>, scalar_prefetch = 1 : i64, scratch_operands = 1 : i64, tpu.core_type = #tpu.core_type<tc>, window_params = [{transform_indices = @transform_0, window_bounds = array<i64: 6, 128>}, {pipeline_mode = #tpu.pipeline_mode<synchronous>, transform_indices = @transform_1, window_bounds = array<i64: 32, 128>}, {transform_indices = @transform_2, window_bounds = array<i64: 24, 4>}]} {
    %c6_i32 = arith.constant 6 : i32
    %0 = arith.muli %arg0, %c6_i32 : i32
    %c0_i32 = arith.constant 0 : i32
    %1 = arith.addi %0, %c0_i32 : i32
    %c5_i32 = arith.constant 5 : i32
    %2 = arith.minsi %1, %c5_i32 : i32
    %c0 = arith.constant 0 : index
    %c0_0 = arith.constant 0 : index
    %3 = vector.load %arg2[%c0, %c0_0] : memref<6x128xf32, #tpu.memory_space<vmem>>, vector<1x128xf32>
    %c4_i32 = arith.constant 4 : i32
    %4 = arith.muli %2, %c4_i32 : i32
    %c0_i32_1 = arith.constant 0 : i32
    %5 = arith.addi %4, %c0_i32_1 : i32
    %6 = arith.index_cast %5 : i32 to index
    %7 = memref.load %arg1[%6] : memref<24xi32, #tpu.memory_space<smem>>
    %c0_i32_2 = arith.constant 0 : i32
    %8 = arith.cmpi eq, %7, %c0_i32_2 : i32
    %c128_i32 = arith.constant 128 : i32
    %9 = arith.subi %c128_i32, %7 : i32
    %c0_i32_3 = arith.constant 0 : i32
    %10 = arith.select %8, %c0_i32_3, %9 : i32
    %11 = tpu.dynamic_rotate %3 by %10 dim 1 : vector<1x128xf32>, i32 -> vector<1x128xf32>
    %12 = vector.extract_strided_slice %11 {offsets = [0, 0], sizes = [1, 32], strides = [1, 1]} : vector<1x128xf32> to vector<1x32xf32>
    %c0_4 = arith.constant 0 : index
    %c0_5 = arith.constant 0 : index
    %13 = vector.load %arg5[%c0_4, %c0_5] : memref<24x32xf32, #tpu.memory_space<vmem>>, vector<1x32xf32>
    tpu.vector_store %arg5[%c0_4, %c0_5], %12 {strides = array<i32>} : memref<24x32xf32, #tpu.memory_space<vmem>>, vector<1x32xf32>,
    %c4_i32_6 = arith.constant 4 : i32
    %14 = arith.muli %2, %c4_i32_6 : i32
    %c1_i32 = arith.constant 1 : i32
    %15 = arith.addi %14, %c1_i32 : i32
    %16 = arith.index_cast %15 : i32 to index
    %17 = memref.load %arg1[%16] : memref<24xi32, #tpu.memory_space<smem>>
    %c0_i32_7 = arith.constant 0 : i32
    %18 = arith.cmpi eq, %17, %c0_i32_7 : i32
    %c128_i32_8 = arith.constant 128 : i32
    %19 = arith.subi %c128_i32_8, %17 : i32
    %c0_i32_9 = arith.constant 0 : i32
    %20 = arith.select %18, %c0_i32_9, %19 : i32
    %21 = tpu.dynamic_rotate %3 by %20 dim 1 : vector<1x128xf32>, i32 -> vector<1x128xf32>
    %22 = vector.extract_strided_slice %21 {offsets = [0, 0], sizes = [1, 32], strides = [1, 1]} : vector<1x128xf32> to vector<1x32xf32>
    %c1 = arith.constant 1 : index
    %c0_10 = arith.constant 0 : index
    %23 = vector.load %arg5[%c1, %c0_10] : memref<24x32xf32, #tpu.memory_space<vmem>>, vector<1x32xf32>
    tpu.vector_store %arg5[%c1, %c0_10], %22 {strides = array<i32>} : memref<24x32xf32, #tpu.memory_space<vmem>>, vector<1x32xf32>,
    %c4_i32_11 = arith.constant 4 : i32
    %24 = arith.muli %2, %c4_i32_11 : i32
    %c2_i32 = arith.constant 2 : i32
    %25 = arith.addi %24, %c2_i32 : i32
    %26 = arith.index_cast %25 : i32 to index
    %27 = memref.load %arg1[%26] : memref<24xi32, #tpu.memory_space<smem>>
    %c0_i32_12 = arith.constant 0 : i32
    %28 = arith.cmpi eq, %27, %c0_i32_12 : i32
    %c128_i32_13 = arith.constant 128 : i32
    %29 = arith.subi %c128_i32_13, %27 : i32
    %c0_i32_14 = arith.constant 0 : i32
    %30 = arith.select %28, %c0_i32_14, %29 : i32
    %31 = tpu.dynamic_rotate %3 by %30 dim 1 : vector<1x128xf32>, i32 -> vector<1x128xf32>
    %32 = vector.extract_strided_slice %31 {offsets = [0, 0], sizes = [1, 32], strides = [1, 1]} : vector<1x128xf32> to vector<1x32xf32>
    %c2 = arith.constant 2 : index
    %c0_15 = arith.constant 0 : index
    %33 = vector.load %arg5[%c2, %c0_15] : memref<24x32xf32, #tpu.memory_space<vmem>>, vector<1x32xf32>
    tpu.vector_store %arg5[%c2, %c0_15], %32 {strides = array<i32>} : memref<24x32xf32, #tpu.memory_space<vmem>>, vector<1x32xf32>,
    %c4_i32_16 = arith.constant 4 : i32
    %34 = arith.muli %2, %c4_i32_16 : i32
    %c3_i32 = arith.constant 3 : i32
    %35 = arith.addi %34, %c3_i32 : i32
    %36 = arith.index_cast %35 : i32 to index
    %37 = memref.load %arg1[%36] : memref<24xi32, #tpu.memory_space<smem>>
    %c0_i32_17 = arith.constant 0 : i32
    %38 = arith.cmpi eq, %37, %c0_i32_17 : i32
    %c128_i32_18 = arith.constant 128 : i32
    %39 = arith.subi %c128_i32_18, %37 : i32
    %c0_i32_19 = arith.constant 0 : i32
    %40 = arith.select %38, %c0_i32_19, %39 : i32
    %41 = tpu.dynamic_rotate %3 by %40 dim 1 : vector<1x128xf32>, i32 -> vector<1x128xf32>
    %42 = vector.extract_strided_slice %41 {offsets = [0, 0], sizes = [1, 32], strides = [1, 1]} : vector<1x128xf32> to vector<1x32xf32>
    %c3 = arith.constant 3 : index
    %c0_20 = arith.constant 0 : index
    %43 = vector.load %arg5[%c3, %c0_20] : memref<24x32xf32, #tpu.memory_space<vmem>>, vector<1x32xf32>
    tpu.vector_store %arg5[%c3, %c0_20], %42 {strides = array<i32>} : memref<24x32xf32, #tpu.memory_space<vmem>>, vector<1x32xf32>,
    %c1_i32_21 = arith.constant 1 : i32
    %44 = arith.addi %0, %c1_i32_21 : i32
    %c5_i32_22 = arith.constant 5 : i32
    %45 = arith.minsi %44, %c5_i32_22 : i32
    %c1_23 = arith.constant 1 : index
    %c0_24 = arith.constant 0 : index
    %46 = vector.load %arg2[%c1_23, %c0_24] : memref<6x128xf32, #tpu.memory_space<vmem>>, vector<1x128xf32>
    %c4_i32_25 = arith.constant 4 : i32
    %47 = arith.muli %45, %c4_i32_25 : i32
    %c0_i32_26 = arith.constant 0 : i32
    %48 = arith.addi %47, %c0_i32_26 : i32
    %49 = arith.index_cast %48 : i32 to index
    %50 = memref.load %arg1[%49] : memref<24xi32, #tpu.memory_space<smem>>
    %c0_i32_27 = arith.constant 0 : i32
    %51 = arith.cmpi eq, %50, %c0_i32_27 : i32
    %c128_i32_28 = arith.constant 128 : i32
    %52 = arith.subi %c128_i32_28, %50 : i32
    %c0_i32_29 = arith.constant 0 : i32
    %53 = arith.select %51, %c0_i32_29, %52 : i32
    %54 = tpu.dynamic_rotate %46 by %53 dim 1 : vector<1x128xf32>, i32 -> vector<1x128xf32>
    %55 = vector.extract_strided_slice %54 {offsets = [0, 0], sizes = [1, 32], strides = [1, 1]} : vector<1x128xf32> to vector<1x32xf32>
    %c4 = arith.constant 4 : index
    %c0_30 = arith.constant 0 : index
    %56 = vector.load %arg5[%c4, %c0_30] : memref<24x32xf32, #tpu.memory_space<vmem>>, vector<1x32xf32>
    tpu.vector_store %arg5[%c4, %c0_30], %55 {strides = array<i32>} : memref<24x32xf32, #tpu.memory_space<vmem>>, vector<1x32xf32>,
    %c4_i32_31 = arith.constant 4 : i32
    %57 = arith.muli %45, %c4_i32_31 : i32
    %c1_i32_32 = arith.constant 1 : i32
    %58 = arith.addi %57, %c1_i32_32 : i32
    %59 = arith.index_cast %58 : i32 to index
    %60 = memref.load %arg1[%59] : memref<24xi32, #tpu.memory_space<smem>>
    %c0_i32_33 = arith.constant 0 : i32
    %61 = arith.cmpi eq, %60, %c0_i32_33 : i32
    %c128_i32_34 = arith.constant 128 : i32
    %62 = arith.subi %c128_i32_34, %60 : i32
    %c0_i32_35 = arith.constant 0 : i32
    %63 = arith.select %61, %c0_i32_35, %62 : i32
    %64 = tpu.dynamic_rotate %46 by %63 dim 1 : vector<1x128xf32>, i32 -> vector<1x128xf32>
    %65 = vector.extract_strided_slice %64 {offsets = [0, 0], sizes = [1, 32], strides = [1, 1]} : vector<1x128xf32> to vector<1x32xf32>
    %c5 = arith.constant 5 : index
    %c0_36 = arith.constant 0 : index
    %66 = vector.load %arg5[%c5, %c0_36] : memref<24x32xf32, #tpu.memory_space<vmem>>, vector<1x32xf32>
    tpu.vector_store %arg5[%c5, %c0_36], %65 {strides = array<i32>} : memref<24x32xf32, #tpu.memory_space<vmem>>, vector<1x32xf32>,
    %c4_i32_37 = arith.constant 4 : i32
    %67 = arith.muli %45, %c4_i32_37 : i32
    %c2_i32_38 = arith.constant 2 : i32
    %68 = arith.addi %67, %c2_i32_38 : i32
    %69 = arith.index_cast %68 : i32 to index
    %70 = memref.load %arg1[%69] : memref<24xi32, #tpu.memory_space<smem>>
    %c0_i32_39 = arith.constant 0 : i32
    %71 = arith.cmpi eq, %70, %c0_i32_39 : i32
    %c128_i32_40 = arith.constant 128 : i32
    %72 = arith.subi %c128_i32_40, %70 : i32
    %c0_i32_41 = arith.constant 0 : i32
    %73 = arith.select %71, %c0_i32_41, %72 : i32
    %74 = tpu.dynamic_rotate %46 by %73 dim 1 : vector<1x128xf32>, i32 -> vector<1x128xf32>
    %75 = vector.extract_strided_slice %74 {offsets = [0, 0], sizes = [1, 32], strides = [1, 1]} : vector<1x128xf32> to vector<1x32xf32>
    %c6 = arith.constant 6 : index
    %c0_42 = arith.constant 0 : index
    %76 = vector.load %arg5[%c6, %c0_42] : memref<24x32xf32, #tpu.memory_space<vmem>>, vector<1x32xf32>
    tpu.vector_store %arg5[%c6, %c0_42], %75 {strides = array<i32>} : memref<24x32xf32, #tpu.memory_space<vmem>>, vector<1x32xf32>,
    %c4_i32_43 = arith.constant 4 : i32
    %77 = arith.muli %45, %c4_i32_43 : i32
    %c3_i32_44 = arith.constant 3 : i32
    %78 = arith.addi %77, %c3_i32_44 : i32
    %79 = arith.index_cast %78 : i32 to index
    %80 = memref.load %arg1[%79] : memref<24xi32, #tpu.memory_space<smem>>
    %c0_i32_45 = arith.constant 0 : i32
    %81 = arith.cmpi eq, %80, %c0_i32_45 : i32
    %c128_i32_46 = arith.constant 128 : i32
    %82 = arith.subi %c128_i32_46, %80 : i32
    %c0_i32_47 = arith.constant 0 : i32
    %83 = arith.select %81, %c0_i32_47, %82 : i32
    %84 = tpu.dynamic_rotate %46 by %83 dim 1 : vector<1x128xf32>, i32 -> vector<1x128xf32>
    %85 = vector.extract_strided_slice %84 {offsets = [0, 0], sizes = [1, 32], strides = [1, 1]} : vector<1x128xf32> to vector<1x32xf32>
    %c7 = arith.constant 7 : index
    %c0_48 = arith.constant 0 : index
    %86 = vector.load %arg5[%c7, %c0_48] : memref<24x32xf32, #tpu.memory_space<vmem>>, vector<1x32xf32>
    tpu.vector_store %arg5[%c7, %c0_48], %85 {strides = array<i32>} : memref<24x32xf32, #tpu.memory_space<vmem>>, vector<1x32xf32>,
    %c2_i32_49 = arith.constant 2 : i32
    %87 = arith.addi %0, %c2_i32_49 : i32
    %c5_i32_50 = arith.constant 5 : i32
    %88 = arith.minsi %87, %c5_i32_50 : i32
    %c2_51 = arith.constant 2 : index
    %c0_52 = arith.constant 0 : index
    %89 = vector.load %arg2[%c2_51, %c0_52] : memref<6x128xf32, #tpu.memory_space<vmem>>, vector<1x128xf32>
    %c4_i32_53 = arith.constant 4 : i32
    %90 = arith.muli %88, %c4_i32_53 : i32
    %c0_i32_54 = arith.constant 0 : i32
    %91 = arith.addi %90, %c0_i32_54 : i32
    %92 = arith.index_cast %91 : i32 to index
    %93 = memref.load %arg1[%92] : memref<24xi32, #tpu.memory_space<smem>>
    %c0_i32_55 = arith.constant 0 : i32
    %94 = arith.cmpi eq, %93, %c0_i32_55 : i32
    %c128_i32_56 = arith.constant 128 : i32
    %95 = arith.subi %c128_i32_56, %93 : i32
    %c0_i32_57 = arith.constant 0 : i32
    %96 = arith.select %94, %c0_i32_57, %95 : i32
    %97 = tpu.dynamic_rotate %89 by %96 dim 1 : vector<1x128xf32>, i32 -> vector<1x128xf32>
    %98 = vector.extract_strided_slice %97 {offsets = [0, 0], sizes = [1, 32], strides = [1, 1]} : vector<1x128xf32> to vector<1x32xf32>
    %c8 = arith.constant 8 : index
    %c0_58 = arith.constant 0 : index
    %99 = vector.load %arg5[%c8, %c0_58] : memref<24x32xf32, #tpu.memory_space<vmem>>, vector<1x32xf32>
    tpu.vector_store %arg5[%c8, %c0_58], %98 {strides = array<i32>} : memref<24x32xf32, #tpu.memory_space<vmem>>, vector<1x32xf32>,
    %c4_i32_59 = arith.constant 4 : i32
    %100 = arith.muli %88, %c4_i32_59 : i32
    %c1_i32_60 = arith.constant 1 : i32
    %101 = arith.addi %100, %c1_i32_60 : i32
    %102 = arith.index_cast %101 : i32 to index
    %103 = memref.load %arg1[%102] : memref<24xi32, #tpu.memory_space<smem>>
    %c0_i32_61 = arith.constant 0 : i32
    %104 = arith.cmpi eq, %103, %c0_i32_61 : i32
    %c128_i32_62 = arith.constant 128 : i32
    %105 = arith.subi %c128_i32_62, %103 : i32
    %c0_i32_63 = arith.constant 0 : i32
    %106 = arith.select %104, %c0_i32_63, %105 : i32
    %107 = tpu.dynamic_rotate %89 by %106 dim 1 : vector<1x128xf32>, i32 -> vector<1x128xf32>
    %108 = vector.extract_strided_slice %107 {offsets = [0, 0], sizes = [1, 32], strides = [1, 1]} : vector<1x128xf32> to vector<1x32xf32>
    %c9 = arith.constant 9 : index
    %c0_64 = arith.constant 0 : index
    %109 = vector.load %arg5[%c9, %c0_64] : memref<24x32xf32, #tpu.memory_space<vmem>>, vector<1x32xf32>
    tpu.vector_store %arg5[%c9, %c0_64], %108 {strides = array<i32>} : memref<24x32xf32, #tpu.memory_space<vmem>>, vector<1x32xf32>,
    %c4_i32_65 = arith.constant 4 : i32
    %110 = arith.muli %88, %c4_i32_65 : i32
    %c2_i32_66 = arith.constant 2 : i32
    %111 = arith.addi %110, %c2_i32_66 : i32
    %112 = arith.index_cast %111 : i32 to index
    %113 = memref.load %arg1[%112] : memref<24xi32, #tpu.memory_space<smem>>
    %c0_i32_67 = arith.constant 0 : i32
    %114 = arith.cmpi eq, %113, %c0_i32_67 : i32
    %c128_i32_68 = arith.constant 128 : i32
    %115 = arith.subi %c128_i32_68, %113 : i32
    %c0_i32_69 = arith.constant 0 : i32
    %116 = arith.select %114, %c0_i32_69, %115 : i32
    %117 = tpu.dynamic_rotate %89 by %116 dim 1 : vector<1x128xf32>, i32 -> vector<1x128xf32>
    %118 = vector.extract_strided_slice %117 {offsets = [0, 0], sizes = [1, 32], strides = [1, 1]} : vector<1x128xf32> to vector<1x32xf32>
    %c10 = arith.constant 10 : index
    %c0_70 = arith.constant 0 : index
    %119 = vector.load %arg5[%c10, %c0_70] : memref<24x32xf32, #tpu.memory_space<vmem>>, vector<1x32xf32>
    tpu.vector_store %arg5[%c10, %c0_70], %118 {strides = array<i32>} : memref<24x32xf32, #tpu.memory_space<vmem>>, vector<1x32xf32>,
    %c4_i32_71 = arith.constant 4 : i32
    %120 = arith.muli %88, %c4_i32_71 : i32
    %c3_i32_72 = arith.constant 3 : i32
    %121 = arith.addi %120, %c3_i32_72 : i32
    %122 = arith.index_cast %121 : i32 to index
    %123 = memref.load %arg1[%122] : memref<24xi32, #tpu.memory_space<smem>>
    %c0_i32_73 = arith.constant 0 : i32
    %124 = arith.cmpi eq, %123, %c0_i32_73 : i32
    %c128_i32_74 = arith.constant 128 : i32
    %125 = arith.subi %c128_i32_74, %123 : i32
    %c0_i32_75 = arith.constant 0 : i32
    %126 = arith.select %124, %c0_i32_75, %125 : i32
    %127 = tpu.dynamic_rotate %89 by %126 dim 1 : vector<1x128xf32>, i32 -> vector<1x128xf32>
    %128 = vector.extract_strided_slice %127 {offsets = [0, 0], sizes = [1, 32], strides = [1, 1]} : vector<1x128xf32> to vector<1x32xf32>
    %c11 = arith.constant 11 : index
    %c0_76 = arith.constant 0 : index
    %129 = vector.load %arg5[%c11, %c0_76] : memref<24x32xf32, #tpu.memory_space<vmem>>, vector<1x32xf32>
    tpu.vector_store %arg5[%c11, %c0_76], %128 {strides = array<i32>} : memref<24x32xf32, #tpu.memory_space<vmem>>, vector<1x32xf32>,
    %c3_i32_77 = arith.constant 3 : i32
    %130 = arith.addi %0, %c3_i32_77 : i32
    %c5_i32_78 = arith.constant 5 : i32
    %131 = arith.minsi %130, %c5_i32_78 : i32
    %c3_79 = arith.constant 3 : index
    %c0_80 = arith.constant 0 : index
    %132 = vector.load %arg2[%c3_79, %c0_80] : memref<6x128xf32, #tpu.memory_space<vmem>>, vector<1x128xf32>
    %c4_i32_81 = arith.constant 4 : i32
    %133 = arith.muli %131, %c4_i32_81 : i32
    %c0_i32_82 = arith.constant 0 : i32
    %134 = arith.addi %133, %c0_i32_82 : i32
    %135 = arith.index_cast %134 : i32 to index
    %136 = memref.load %arg1[%135] : memref<24xi32, #tpu.memory_space<smem>>
    %c0_i32_83 = arith.constant 0 : i32
    %137 = arith.cmpi eq, %136, %c0_i32_83 : i32
    %c128_i32_84 = arith.constant 128 : i32
    %138 = arith.subi %c128_i32_84, %136 : i32
    %c0_i32_85 = arith.constant 0 : i32
    %139 = arith.select %137, %c0_i32_85, %138 : i32
    %140 = tpu.dynamic_rotate %132 by %139 dim 1 : vector<1x128xf32>, i32 -> vector<1x128xf32>
    %141 = vector.extract_strided_slice %140 {offsets = [0, 0], sizes = [1, 32], strides = [1, 1]} : vector<1x128xf32> to vector<1x32xf32>
    %c12 = arith.constant 12 : index
    %c0_86 = arith.constant 0 : index
    %142 = vector.load %arg5[%c12, %c0_86] : memref<24x32xf32, #tpu.memory_space<vmem>>, vector<1x32xf32>
    tpu.vector_store %arg5[%c12, %c0_86], %141 {strides = array<i32>} : memref<24x32xf32, #tpu.memory_space<vmem>>, vector<1x32xf32>,
    %c4_i32_87 = arith.constant 4 : i32
    %143 = arith.muli %131, %c4_i32_87 : i32
    %c1_i32_88 = arith.constant 1 : i32
    %144 = arith.addi %143, %c1_i32_88 : i32
    %145 = arith.index_cast %144 : i32 to index
    %146 = memref.load %arg1[%145] : memref<24xi32, #tpu.memory_space<smem>>
    %c0_i32_89 = arith.constant 0 : i32
    %147 = arith.cmpi eq, %146, %c0_i32_89 : i32
    %c128_i32_90 = arith.constant 128 : i32
    %148 = arith.subi %c128_i32_90, %146 : i32
    %c0_i32_91 = arith.constant 0 : i32
    %149 = arith.select %147, %c0_i32_91, %148 : i32
    %150 = tpu.dynamic_rotate %132 by %149 dim 1 : vector<1x128xf32>, i32 -> vector<1x128xf32>
    %151 = vector.extract_strided_slice %150 {offsets = [0, 0], sizes = [1, 32], strides = [1, 1]} : vector<1x128xf32> to vector<1x32xf32>
    %c13 = arith.constant 13 : index
    %c0_92 = arith.constant 0 : index
    %152 = vector.load %arg5[%c13, %c0_92] : memref<24x32xf32, #tpu.memory_space<vmem>>, vector<1x32xf32>
    tpu.vector_store %arg5[%c13, %c0_92], %151 {strides = array<i32>} : memref<24x32xf32, #tpu.memory_space<vmem>>, vector<1x32xf32>,
    %c4_i32_93 = arith.constant 4 : i32
    %153 = arith.muli %131, %c4_i32_93 : i32
    %c2_i32_94 = arith.constant 2 : i32
    %154 = arith.addi %153, %c2_i32_94 : i32
    %155 = arith.index_cast %154 : i32 to index
    %156 = memref.load %arg1[%155] : memref<24xi32, #tpu.memory_space<smem>>
    %c0_i32_95 = arith.constant 0 : i32
    %157 = arith.cmpi eq, %156, %c0_i32_95 : i32
    %c128_i32_96 = arith.constant 128 : i32
    %158 = arith.subi %c128_i32_96, %156 : i32
    %c0_i32_97 = arith.constant 0 : i32
    %159 = arith.select %157, %c0_i32_97, %158 : i32
    %160 = tpu.dynamic_rotate %132 by %159 dim 1 : vector<1x128xf32>, i32 -> vector<1x128xf32>
    %161 = vector.extract_strided_slice %160 {offsets = [0, 0], sizes = [1, 32], strides = [1, 1]} : vector<1x128xf32> to vector<1x32xf32>
    %c14 = arith.constant 14 : index
    %c0_98 = arith.constant 0 : index
    %162 = vector.load %arg5[%c14, %c0_98] : memref<24x32xf32, #tpu.memory_space<vmem>>, vector<1x32xf32>
    tpu.vector_store %arg5[%c14, %c0_98], %161 {strides = array<i32>} : memref<24x32xf32, #tpu.memory_space<vmem>>, vector<1x32xf32>,
    %c4_i32_99 = arith.constant 4 : i32
    %163 = arith.muli %131, %c4_i32_99 : i32
    %c3_i32_100 = arith.constant 3 : i32
    %164 = arith.addi %163, %c3_i32_100 : i32
    %165 = arith.index_cast %164 : i32 to index
    %166 = memref.load %arg1[%165] : memref<24xi32, #tpu.memory_space<smem>>
    %c0_i32_101 = arith.constant 0 : i32
    %167 = arith.cmpi eq, %166, %c0_i32_101 : i32
    %c128_i32_102 = arith.constant 128 : i32
    %168 = arith.subi %c128_i32_102, %166 : i32
    %c0_i32_103 = arith.constant 0 : i32
    %169 = arith.select %167, %c0_i32_103, %168 : i32
    %170 = tpu.dynamic_rotate %132 by %169 dim 1 : vector<1x128xf32>, i32 -> vector<1x128xf32>
    %171 = vector.extract_strided_slice %170 {offsets = [0, 0], sizes = [1, 32], strides = [1, 1]} : vector<1x128xf32> to vector<1x32xf32>
    %c15 = arith.constant 15 : index
    %c0_104 = arith.constant 0 : index
    %172 = vector.load %arg5[%c15, %c0_104] : memref<24x32xf32, #tpu.memory_space<vmem>>, vector<1x32xf32>
    tpu.vector_store %arg5[%c15, %c0_104], %171 {strides = array<i32>} : memref<24x32xf32, #tpu.memory_space<vmem>>, vector<1x32xf32>,
    %c4_i32_105 = arith.constant 4 : i32
    %173 = arith.addi %0, %c4_i32_105 : i32
    %c5_i32_106 = arith.constant 5 : i32
    %174 = arith.minsi %173, %c5_i32_106 : i32
    %c4_107 = arith.constant 4 : index
    %c0_108 = arith.constant 0 : index
    %175 = vector.load %arg2[%c4_107, %c0_108] : memref<6x128xf32, #tpu.memory_space<vmem>>, vector<1x128xf32>
    %c4_i32_109 = arith.constant 4 : i32
    %176 = arith.muli %174, %c4_i32_109 : i32
    %c0_i32_110 = arith.constant 0 : i32
    %177 = arith.addi %176, %c0_i32_110 : i32
    %178 = arith.index_cast %177 : i32 to index
    %179 = memref.load %arg1[%178] : memref<24xi32, #tpu.memory_space<smem>>
    %c0_i32_111 = arith.constant 0 : i32
    %180 = arith.cmpi eq, %179, %c0_i32_111 : i32
    %c128_i32_112 = arith.constant 128 : i32
    %181 = arith.subi %c128_i32_112, %179 : i32
    %c0_i32_113 = arith.constant 0 : i32
    %182 = arith.select %180, %c0_i32_113, %181 : i32
    %183 = tpu.dynamic_rotate %175 by %182 dim 1 : vector<1x128xf32>, i32 -> vector<1x128xf32>
    %184 = vector.extract_strided_slice %183 {offsets = [0, 0], sizes = [1, 32], strides = [1, 1]} : vector<1x128xf32> to vector<1x32xf32>
    %c16 = arith.constant 16 : index
    %c0_114 = arith.constant 0 : index
    %185 = vector.load %arg5[%c16, %c0_114] : memref<24x32xf32, #tpu.memory_space<vmem>>, vector<1x32xf32>
    tpu.vector_store %arg5[%c16, %c0_114], %184 {strides = array<i32>} : memref<24x32xf32, #tpu.memory_space<vmem>>, vector<1x32xf32>,
    %c4_i32_115 = arith.constant 4 : i32
    %186 = arith.muli %174, %c4_i32_115 : i32
    %c1_i32_116 = arith.constant 1 : i32
    %187 = arith.addi %186, %c1_i32_116 : i32
    %188 = arith.index_cast %187 : i32 to index
    %189 = memref.load %arg1[%188] : memref<24xi32, #tpu.memory_space<smem>>
    %c0_i32_117 = arith.constant 0 : i32
    %190 = arith.cmpi eq, %189, %c0_i32_117 : i32
    %c128_i32_118 = arith.constant 128 : i32
    %191 = arith.subi %c128_i32_118, %189 : i32
    %c0_i32_119 = arith.constant 0 : i32
    %192 = arith.select %190, %c0_i32_119, %191 : i32
    %193 = tpu.dynamic_rotate %175 by %192 dim 1 : vector<1x128xf32>, i32 -> vector<1x128xf32>
    %194 = vector.extract_strided_slice %193 {offsets = [0, 0], sizes = [1, 32], strides = [1, 1]} : vector<1x128xf32> to vector<1x32xf32>
    %c17 = arith.constant 17 : index
    %c0_120 = arith.constant 0 : index
    %195 = vector.load %arg5[%c17, %c0_120] : memref<24x32xf32, #tpu.memory_space<vmem>>, vector<1x32xf32>
    tpu.vector_store %arg5[%c17, %c0_120], %194 {strides = array<i32>} : memref<24x32xf32, #tpu.memory_space<vmem>>, vector<1x32xf32>,
    %c4_i32_121 = arith.constant 4 : i32
    %196 = arith.muli %174, %c4_i32_121 : i32
    %c2_i32_122 = arith.constant 2 : i32
    %197 = arith.addi %196, %c2_i32_122 : i32
    %198 = arith.index_cast %197 : i32 to index
    %199 = memref.load %arg1[%198] : memref<24xi32, #tpu.memory_space<smem>>
    %c0_i32_123 = arith.constant 0 : i32
    %200 = arith.cmpi eq, %199, %c0_i32_123 : i32
    %c128_i32_124 = arith.constant 128 : i32
    %201 = arith.subi %c128_i32_124, %199 : i32
    %c0_i32_125 = arith.constant 0 : i32
    %202 = arith.select %200, %c0_i32_125, %201 : i32
    %203 = tpu.dynamic_rotate %175 by %202 dim 1 : vector<1x128xf32>, i32 -> vector<1x128xf32>
    %204 = vector.extract_strided_slice %203 {offsets = [0, 0], sizes = [1, 32], strides = [1, 1]} : vector<1x128xf32> to vector<1x32xf32>
    %c18 = arith.constant 18 : index
    %c0_126 = arith.constant 0 : index
    %205 = vector.load %arg5[%c18, %c0_126] : memref<24x32xf32, #tpu.memory_space<vmem>>, vector<1x32xf32>
    tpu.vector_store %arg5[%c18, %c0_126], %204 {strides = array<i32>} : memref<24x32xf32, #tpu.memory_space<vmem>>, vector<1x32xf32>,
    %c4_i32_127 = arith.constant 4 : i32
    %206 = arith.muli %174, %c4_i32_127 : i32
    %c3_i32_128 = arith.constant 3 : i32
    %207 = arith.addi %206, %c3_i32_128 : i32
    %208 = arith.index_cast %207 : i32 to index
    %209 = memref.load %arg1[%208] : memref<24xi32, #tpu.memory_space<smem>>
    %c0_i32_129 = arith.constant 0 : i32
    %210 = arith.cmpi eq, %209, %c0_i32_129 : i32
    %c128_i32_130 = arith.constant 128 : i32
    %211 = arith.subi %c128_i32_130, %209 : i32
    %c0_i32_131 = arith.constant 0 : i32
    %212 = arith.select %210, %c0_i32_131, %211 : i32
    %213 = tpu.dynamic_rotate %175 by %212 dim 1 : vector<1x128xf32>, i32 -> vector<1x128xf32>
    %214 = vector.extract_strided_slice %213 {offsets = [0, 0], sizes = [1, 32], strides = [1, 1]} : vector<1x128xf32> to vector<1x32xf32>
    %c19 = arith.constant 19 : index
    %c0_132 = arith.constant 0 : index
    %215 = vector.load %arg5[%c19, %c0_132] : memref<24x32xf32, #tpu.memory_space<vmem>>, vector<1x32xf32>
    tpu.vector_store %arg5[%c19, %c0_132], %214 {strides = array<i32>} : memref<24x32xf32, #tpu.memory_space<vmem>>, vector<1x32xf32>,
    %c5_i32_133 = arith.constant 5 : i32
    %216 = arith.addi %0, %c5_i32_133 : i32
    %c5_i32_134 = arith.constant 5 : i32
    %217 = arith.minsi %216, %c5_i32_134 : i32
    %c5_135 = arith.constant 5 : index
    %c0_136 = arith.constant 0 : index
    %218 = vector.load %arg2[%c5_135, %c0_136] : memref<6x128xf32, #tpu.memory_space<vmem>>, vector<1x128xf32>
    %c4_i32_137 = arith.constant 4 : i32
    %219 = arith.muli %217, %c4_i32_137 : i32
    %c0_i32_138 = arith.constant 0 : i32
    %220 = arith.addi %219, %c0_i32_138 : i32
    %221 = arith.index_cast %220 : i32 to index
    %222 = memref.load %arg1[%221] : memref<24xi32, #tpu.memory_space<smem>>
    %c0_i32_139 = arith.constant 0 : i32
    %223 = arith.cmpi eq, %222, %c0_i32_139 : i32
    %c128_i32_140 = arith.constant 128 : i32
    %224 = arith.subi %c128_i32_140, %222 : i32
    %c0_i32_141 = arith.constant 0 : i32
    %225 = arith.select %223, %c0_i32_141, %224 : i32
    %226 = tpu.dynamic_rotate %218 by %225 dim 1 : vector<1x128xf32>, i32 -> vector<1x128xf32>
    %227 = vector.extract_strided_slice %226 {offsets = [0, 0], sizes = [1, 32], strides = [1, 1]} : vector<1x128xf32> to vector<1x32xf32>
    %c20 = arith.constant 20 : index
    %c0_142 = arith.constant 0 : index
    %228 = vector.load %arg5[%c20, %c0_142] : memref<24x32xf32, #tpu.memory_space<vmem>>, vector<1x32xf32>
    tpu.vector_store %arg5[%c20, %c0_142], %227 {strides = array<i32>} : memref<24x32xf32, #tpu.memory_space<vmem>>, vector<1x32xf32>,
    %c4_i32_143 = arith.constant 4 : i32
    %229 = arith.muli %217, %c4_i32_143 : i32
    %c1_i32_144 = arith.constant 1 : i32
    %230 = arith.addi %229, %c1_i32_144 : i32
    %231 = arith.index_cast %230 : i32 to index
    %232 = memref.load %arg1[%231] : memref<24xi32, #tpu.memory_space<smem>>
    %c0_i32_145 = arith.constant 0 : i32
    %233 = arith.cmpi eq, %232, %c0_i32_145 : i32
    %c128_i32_146 = arith.constant 128 : i32
    %234 = arith.subi %c128_i32_146, %232 : i32
    %c0_i32_147 = arith.constant 0 : i32
    %235 = arith.select %233, %c0_i32_147, %234 : i32
    %236 = tpu.dynamic_rotate %218 by %235 dim 1 : vector<1x128xf32>, i32 -> vector<1x128xf32>
    %237 = vector.extract_strided_slice %236 {offsets = [0, 0], sizes = [1, 32], strides = [1, 1]} : vector<1x128xf32> to vector<1x32xf32>
    %c21 = arith.constant 21 : index
    %c0_148 = arith.constant 0 : index
    %238 = vector.load %arg5[%c21, %c0_148] : memref<24x32xf32, #tpu.memory_space<vmem>>, vector<1x32xf32>
    tpu.vector_store %arg5[%c21, %c0_148], %237 {strides = array<i32>} : memref<24x32xf32, #tpu.memory_space<vmem>>, vector<1x32xf32>,
    %c4_i32_149 = arith.constant 4 : i32
    %239 = arith.muli %217, %c4_i32_149 : i32
    %c2_i32_150 = arith.constant 2 : i32
    %240 = arith.addi %239, %c2_i32_150 : i32
    %241 = arith.index_cast %240 : i32 to index
    %242 = memref.load %arg1[%241] : memref<24xi32, #tpu.memory_space<smem>>
    %c0_i32_151 = arith.constant 0 : i32
    %243 = arith.cmpi eq, %242, %c0_i32_151 : i32
    %c128_i32_152 = arith.constant 128 : i32
    %244 = arith.subi %c128_i32_152, %242 : i32
    %c0_i32_153 = arith.constant 0 : i32
    %245 = arith.select %243, %c0_i32_153, %244 : i32
    %246 = tpu.dynamic_rotate %218 by %245 dim 1 : vector<1x128xf32>, i32 -> vector<1x128xf32>
    %247 = vector.extract_strided_slice %246 {offsets = [0, 0], sizes = [1, 32], strides = [1, 1]} : vector<1x128xf32> to vector<1x32xf32>
    %c22 = arith.constant 22 : index
    %c0_154 = arith.constant 0 : index
    %248 = vector.load %arg5[%c22, %c0_154] : memref<24x32xf32, #tpu.memory_space<vmem>>, vector<1x32xf32>
    tpu.vector_store %arg5[%c22, %c0_154], %247 {strides = array<i32>} : memref<24x32xf32, #tpu.memory_space<vmem>>, vector<1x32xf32>,
    %c4_i32_155 = arith.constant 4 : i32
    %249 = arith.muli %217, %c4_i32_155 : i32
    %c3_i32_156 = arith.constant 3 : i32
    %250 = arith.addi %249, %c3_i32_156 : i32
    %251 = arith.index_cast %250 : i32 to index
    %252 = memref.load %arg1[%251] : memref<24xi32, #tpu.memory_space<smem>>
    %c0_i32_157 = arith.constant 0 : i32
    %253 = arith.cmpi eq, %252, %c0_i32_157 : i32
    %c128_i32_158 = arith.constant 128 : i32
    %254 = arith.subi %c128_i32_158, %252 : i32
    %c0_i32_159 = arith.constant 0 : i32
    %255 = arith.select %253, %c0_i32_159, %254 : i32
    %256 = tpu.dynamic_rotate %218 by %255 dim 1 : vector<1x128xf32>, i32 -> vector<1x128xf32>
    %257 = vector.extract_strided_slice %256 {offsets = [0, 0], sizes = [1, 32], strides = [1, 1]} : vector<1x128xf32> to vector<1x32xf32>
    %c23 = arith.constant 23 : index
    %c0_160 = arith.constant 0 : index
    %258 = vector.load %arg5[%c23, %c0_160] : memref<24x32xf32, #tpu.memory_space<vmem>>, vector<1x32xf32>
    tpu.vector_store %arg5[%c23, %c0_160], %257 {strides = array<i32>} : memref<24x32xf32, #tpu.memory_space<vmem>>, vector<1x32xf32>,
    %c0_161 = arith.constant 0 : index
    %c0_162 = arith.constant 0 : index
    %259 = vector.load %arg5[%c0_161, %c0_162] : memref<24x32xf32, #tpu.memory_space<vmem>>, vector<24x32xf32>
    %c0_163 = arith.constant 0 : index
    %c0_164 = arith.constant 0 : index
    %260 = vector.load %arg3[%c0_163, %c0_164] : memref<32x128xf32, #tpu.memory_space<vmem>>, vector<32x128xf32>
    %cst = arith.constant dense<0.000000e+00> : vector<24x128xf32>
    %261 = tpu.matmul %259, %260, %cst {dimension_numbers = #tpu.dot_dimension_numbers<[1], [0], [0], [1], [0, 0, 1, 1], [], []>} : vector<24x32xf32>, vector<32x128xf32>, vector<24x128xf32> -> vector<24x128xf32>
    %262 = vector.extract_strided_slice %261 {offsets = [0, 0], sizes = [24, 4], strides = [1, 1]} : vector<24x128xf32> to vector<24x4xf32>
    %263 = vector.extract_strided_slice %261 {offsets = [0, 64], sizes = [24, 4], strides = [1, 1]} : vector<24x128xf32> to vector<24x4xf32>
    %264 = arith.mulf %262, %262 : vector<24x4xf32>
    %265 = arith.mulf %263, %263 : vector<24x4xf32>
    %266 = arith.addf %264, %265 : vector<24x4xf32>
    %cst_165 = arith.constant dense<0.000000e+00> : vector<24xf32>
    %267 = vector.multi_reduction <add>, %266, %cst_165 [1] : vector<24x4xf32> to vector<24xf32>
    %268 = vector.shape_cast %267 : vector<24xf32> to vector<24x1xf32>
    %269 = tpu.reciprocal %268 {approx = true} : vector<24x1xf32> -> vector<24x1xf32>
    %270 = arith.mulf %268, %269 : vector<24x1xf32>
    %cst_166 = arith.constant 2.000000e+00 : f32
    %271 = vector.broadcast %cst_166 : f32 to vector<24x1xf32>
    %272 = arith.subf %271, %270 : vector<24x1xf32>
    %273 = arith.mulf %269, %272 : vector<24x1xf32>
    %274 = vector.broadcast %273 : vector<24x1xf32> to vector<24x4xf32>
    %275 = arith.mulf %266, %274 : vector<24x4xf32>
    %c0_167 = arith.constant 0 : index
    %c0_168 = arith.constant 0 : index
    %276 = vector.load %arg4[%c0_167, %c0_168] : memref<24x4xf32, #tpu.memory_space<vmem>>, vector<24x4xf32>
    tpu.vector_store %arg4[%c0_167, %c0_168], %275 {strides = array<i32>} : memref<24x4xf32, #tpu.memory_space<vmem>>, vector<24x4xf32>,
    return
  }
  func.func @transform_0(%arg0: i32, %arg1: memref<24xi32, #tpu.memory_space<smem>>) -> (i32, i32) {
    %c0_i32 = arith.constant 0 : i32
    %c0_i32_0 = arith.constant 0 : i32
    return %arg0, %c0_i32 : i32, i32
  }
  func.func @transform_1(%arg0: i32, %arg1: memref<24xi32, #tpu.memory_space<smem>>) -> (i32, i32) {
    %c0_i32 = arith.constant 0 : i32
    %c0_i32_0 = arith.constant 0 : i32
    %c0_i32_1 = arith.constant 0 : i32
    return %c0_i32, %c0_i32_0 : i32, i32
  }
  func.func @transform_2(%arg0: i32, %arg1: memref<24xi32, #tpu.memory_space<smem>>) -> (i32, i32) {
    %c0_i32 = arith.constant 0 : i32
    %c0_i32_0 = arith.constant 0 : i32
    return %arg0, %c0_i32 : i32, i32
  }
}

</mosaic_0001>

<bundles_post_ra>
// kernel: tpu_custom_call.1
= control target key start
LH: loop header
LB: loop body
LE: loop exit
PB: predicated region body
PF: predicated region fallthrough
CT: control target
= control target key end

     0   :  { %s582_s12 = smov [#allocation4]   ;;  %s695_s0 = inlined_call_operand.hbm [shape: s32[24], index: 0, kind: input, shape index: {}]   ;;  %s696_s1 = inlined_call_operand.hbm [shape: f32[6,128], index: 1, kind: input, shape index: {}]   ;;  %s697_s2 = inlined_call_operand.hbm [shape: f32[32,128], index: 2, kind: input, shape index: {}]   ;;  %s698_s3 = inlined_call_operand.vmem [shape: f32[24,4], index: 3, kind: output, shape index: {}]  }
   0x1   :  { %9 = dma.hbm_to_smem %s695_s0, 16, %s582_s12, [#allocation3] }
   0x2   :  { %576 = dma.done.wait [#allocation3], 16 }
   0x3   :  { %577 = vsyncadd [#allocation3], 4294967280 }
   0x4   :  { %11 = sfence }
   0x5   :  { %12 = vsyncpa [#allocation6], 0 }
   0x6   :  { %13 = vsyncpa [#allocation8], 0  ;;  %s583_s15 = smov [#allocation5]   ;;  %s584_s17 = smov [#allocation7]  }
   0x7   :  { %s20_s16 = sshll.u32 %s583_s15, 4  ;;  %s29_s18 = sshll.u32 %s584_s17, 4  ;;  %s21_s16 = int_to_ptr.vmem [resolvable:$true] %s20_s16  ;;  %s30_s18 = int_to_ptr.vmem [resolvable:$true] %s29_s18 }
   0x8   :  { %s544_s19 = scalar_lea.vmem %s21_s16, 128  ;;  %p549_p1 = scmp.lt.s32.totalorder %s21_s16, %s21_s16 }
   0x9   :  { %p545_p0 = scmp.ne.s32.totalorder %s21_s16, %s544_s19  ;;  %p550_p2 = scmp.lt.s32.totalorder %s544_s19, %s544_s19 }
   0xb   :  { %p551_p3 = por %p550_p2, %p549_p1 }
   0xd   :  { %p552_p4 = pnand %p551_p3, %p545_p0 }
   0xf   :  { %555 = shalt.err (!%p552_p4)
}
  0x10   :  { %23 = dma.hbm_to_vmem [thread:$0]  %s696_s1, 128, %s21_s16, [#allocation6]  }
  0x11   :  { %s564_s21 = scalar_lea.vmem %s30_s18, 512  ;;  %p569_p6 = scmp.lt.s32.totalorder %s30_s18, %s30_s18 }
  0x12   :  { %p565_p5 = scmp.ne.s32.totalorder %s30_s18, %s564_s21  ;;  %p570_p7 = scmp.lt.s32.totalorder %s564_s21, %s564_s21 }
  0x14   :  { %p571_p8 = por %p570_p7, %p569_p6 }
  0x16   :  { %p572_p9 = pnand %p571_p8, %p565_p5 }
  0x18   :  { %575 = shalt.err (!%p572_p9)
}
  0x19   :  { %s585_s22 = smov 128   ;;  %s586_s23 = smov 8  }
  0x1a   :  { %35 = dma.hbm_to_vmem [thread:$0]  %s697_s2, 512, %s30_s18, [#allocation8], %s585_s22, %s585_s22, %s586_s23  }
  0x1b   :  { %578 = dma.done.wait [#allocation6], 128  }
  0x1c   :  { %579 = vsyncadd [#allocation6], 4294967168 }
  0x1d   :  { %580 = dma.done.wait [#allocation8], 512  }
  0x1e   :  { %581 = vsyncadd [#allocation8], 4294966784  ;;  %s465_s26 = sld [smem:[#allocation4 + $0xa]]  ;;  %v134_v0 = vld [vmem:[#allocation5 + $0x2] sm:$0x1]  ;;  %v587_v3 = vmov 0.0  }
  0x1f   :  { %s463_s27 = sld [smem:[#allocation4 + $0x8]]  ;;  %v178_v1 = vld [vmem:[#allocation5 + $0x3] sm:$0x1]  ;;  %506 = vmatprep.subr.mxu1 %v587_v3  ;;  %v312_v4 = vld [vmem:[#allocation7 + $0x10] sm:$0xff]  ;;  %489 = vmatprep.subr.mxu0 %v587_v3  ;;  %v311_v5 = vld [vmem:[#allocation7 + $0x8] sm:$0xff]  ;;  %vm588_vm0 = vmmov 0  }
  0x20   :  { %s466_s1 = sld [smem:[#allocation4 + $0xb]]  ;;  %v313_v2 = vld [vmem:[#allocation7 + $0x18] sm:$0xff]  ;;  %v310_v6 = vld [vmem:[#allocation7] sm:$0xff]  ;;  %500 = vmatprep.mubr.msk.f32.mxu1 %vm588_vm0, %v587_v3  ;;  %497 = vmatprep.mubr.msk.f32.mxu0 %vm588_vm0, %v587_v3  ;;  %vm55_vm1 = vcmask 253952   ;;  %vm314_vm2 = vcmask 261120   ;;  %vm422_vm3 = vcmask 31744  }
  0x21   :  { %s464_s28 = sld [smem:[#allocation4 + $0x9]]  ;;  %510 = vmatpush3.msra.mxu1 %v313_v2  ;;  %490 = vmatpush3.msra.mxu0 %v313_v2  ;;  %v45_v7 = vld [vmem:[#allocation5] sm:$0x1]  ;;  %v90_v8 = vld [vmem:[#allocation5 + $0x1] sm:$0x1] }
  0x22   :  { %s468_s29 = sld [smem:[#allocation4 + $0xd]]  ;;  %507 = vmatprep.subr.mxu1 %v587_v3  ;;  %491 = vmatprep.subr.mxu0 %v587_v3  ;;  %v222_v9 = vld [vmem:[#allocation5 + $0x4] sm:$0x1]  ;;  %v266_v10 = vld [vmem:[#allocation5 + $0x5] sm:$0x1] }
  0x23   :  { %s467_s30 = sld [smem:[#allocation4 + $0xc]]  ;;  %511 = vmatpush3.msra.mxu1 %v312_v4  ;;  %492 = vmatpush3.msra.mxu0 %v312_v4 }
  0x24   :  { %p157_p10 = scmp.eq.s32.totalorder %s465_s26, 0  ;;  %s158_s4 = ssub.s32 128, %s465_s26  ;;  %508 = vmatprep.subr.mxu1 %v587_v3  ;;  %493 = vmatprep.subr.mxu0 %v587_v3 }
  0x25   :  { %p137_p11 = scmp.eq.s32.totalorder %s463_s27, 0  ;;  %s138_s5 = ssub.s32 128, %s463_s27  ;;  %512 = vmatpush3.msra.mxu1 %v311_v5  ;;  %494 = vmatpush3.msra.mxu0 %v311_v5 }
  0x26   :  { %s700_s4 = smov (%p157_p10, %s158_s4), 0  ;;  %p167_p12 = scmp.eq.s32.totalorder %s466_s1, 0  ;;  %509 = vmatprep.subr.mxu1 %v587_v3  ;;  %495 = vmatprep.subr.mxu0 %v587_v3 }
  0x27   :  { %s702_s5 = smov (%p137_p11, %s138_s5), 0  ;;  %s160_s6 = sand.u32 127, %s700_s4   ;;  %513 = vmatpush3.msra.mxu1 %v310_v6  ;;  %496 = vmatpush3.msra.mxu0 %v310_v6 }
  0x28   :  { %162 = vrot.lane.b32.xlu1 %v134_v0, %s160_s6  ;;  %s140_s2 = sand.u32 127, %s702_s5   ;;  %s168_s7 = ssub.s32 128, %s466_s1 }
  0x29   :  { %142 = vrot.lane.b32.xlu0 %v134_v0, %s140_s2  ;;  %s704_s7 = smov (%p167_p12, %s168_s7), 0  ;;  %p147_p13 = scmp.eq.s32.totalorder %s464_s28, 0 }
  0x2a   :  { %s148_s8 = ssub.s32 128, %s464_s28  ;;  %s170_s9 = sand.u32 127, %s704_s7  }
  0x2b   :  { %p191_p0 = scmp.eq.s32.totalorder %s468_s29, 0  ;;  %s706_s8 = smov (%p147_p13, %s148_s8), 0 }
  0x2c   :  { %172 = vrot.lane.b32.xlu1 %v134_v0, %s170_s9  ;;  %s192_s10 = ssub.s32 128, %s468_s29  ;;  %p181_p1 = scmp.eq.s32.totalorder %s467_s30, 0 }
  0x2d   :  { %s150_s11 = sand.u32 127, %s706_s8   ;;  %s182_s12 = ssub.s32 128, %s467_s30 }
  0x2e   :  { %152 = vrot.lane.b32.xlu0 %v134_v0, %s150_s11  ;;  %s708_s10 = smov (%p191_p0, %s192_s10), 0  ;;  %s710_s12 = smov (%p181_p1, %s182_s12), 0 }
  0x2f   :  { %s194_s13 = sand.u32 127, %s708_s10   ;;  %s619_s14 = sld [smem:[#allocation4 + $0xf]] }
  0x30   :  { %196 = vrot.lane.b32.xlu1 %v178_v1, %s194_s13  ;;  %s184_s15 = sand.u32 127, %s710_s12   ;;  %s469_s16 = sld [smem:[#allocation4 + $0xe]] }
  0x31   :  { %s623_s17 = sld [smem:[#allocation4 + $0x1]] }
  0x32   :  { %186 = vrot.lane.b32.xlu0 %v178_v1, %s184_s15  ;;  %s626_s18 = sld [smem:[#allocation4]] }
  0x33   :  { %s628_s19 = sld [smem:[#allocation4 + $0x3]] }
  0x34   :  { %s632_s20 = sld [smem:[#allocation4 + $0x2]] }
  0x35   :  { %p211_p2 = scmp.eq.s32.totalorder %s619_s14, 0  ;;  %s212_s0 = ssub.s32 128, %s619_s14 }
  0x36   :  { %p201_p3 = scmp.eq.s32.totalorder %s469_s16, 0  ;;  %s202_s21 = ssub.s32 128, %s469_s16 }
  0x37   :  { %s712_s0 = smov (%p211_p2, %s212_s0), 0  ;;  %p59_p4 = scmp.eq.s32.totalorder %s623_s17, 0 }
  0x38   :  { %s714_s21 = smov (%p201_p3, %s202_s21), 0  ;;  %s214_s22 = sand.u32 127, %s712_s0  }
  0x39   :  { %216 = vrot.lane.b32.xlu1 %v178_v1, %s214_s22  ;;  %s204_s23 = sand.u32 127, %s714_s21   ;;  %s60_s24 = ssub.s32 128, %s623_s17 }
  0x3a   :  { %206 = vrot.lane.b32.xlu0 %v178_v1, %s204_s23  ;;  %s716_s24 = smov (%p59_p4, %s60_s24), 0  ;;  %p48_p5 = scmp.eq.s32.totalorder %s626_s18, 0 }
  0x3b   :  { %s49_s25 = ssub.s32 128, %s626_s18  ;;  %s62_s26 = sand.u32 127, %s716_s24  }
  0x3c   :  { %p79_p6 = scmp.eq.s32.totalorder %s628_s19, 0  ;;  %s718_s25 = smov (%p48_p5, %s49_s25), 0 }
  0x3d   :  { %64 = vrot.lane.b32.xlu1 %v45_v7, %s62_s26  ;;  %s80_s27 = ssub.s32 128, %s628_s19  ;;  %p69_p7 = scmp.eq.s32.totalorder %s632_s20, 0 }
  0x3e   :  { %s51_s1 = sand.u32 127, %s718_s25   ;;  %s70_s28 = ssub.s32 128, %s632_s20 }
  0x3f   :  { %53 = vrot.lane.b32.xlu0 %v45_v7, %s51_s1  ;;  %s720_s27 = smov (%p79_p6, %s80_s27), 0  ;;  %s722_s28 = smov (%p69_p7, %s70_s28), 0 }
  0x40   :  { %s82_s29 = sand.u32 127, %s720_s27   ;;  %s460_s30 = sld [smem:[#allocation4 + $0x5]] }
  0x41   :  { %84 = vrot.lane.b32.xlu1 %v45_v7, %s82_s29  ;;  %s72_s4 = sand.u32 127, %s722_s28   ;;  %s459_s5 = sld [smem:[#allocation4 + $0x4]] }
  0x42   :  { %s462_s6 = sld [smem:[#allocation4 + $0x7]] }
  0x43   :  { %74 = vrot.lane.b32.xlu0 %v45_v7, %s72_s4  ;;  %s461_s2 = sld [smem:[#allocation4 + $0x6]] }
  0x44   :  { %s472_s7 = sld [smem:[#allocation4 + $0x11]] }
  0x45   :  { %s471_s8 = sld [smem:[#allocation4 + $0x10]] }
  0x46   :  { %p103_p8 = scmp.eq.s32.totalorder %s460_s30, 0  ;;  %s104_s9 = ssub.s32 128, %s460_s30 }
  0x47   :  { %p93_p9 = scmp.eq.s32.totalorder %s459_s5, 0  ;;  %s94_s10 = ssub.s32 128, %s459_s5 }
  0x48   :  { %s724_s9 = smov (%p103_p8, %s104_s9), 0  ;;  %p123_p10 = scmp.eq.s32.totalorder %s462_s6, 0 }
  0x49   :  { %s726_s10 = smov (%p93_p9, %s94_s10), 0  ;;  %s106_s11 = sand.u32 127, %s724_s9  }
  0x4a   :  { %108 = vrot.lane.b32.xlu1 %v90_v8, %s106_s11  ;;  %s96_s12 = sand.u32 127, %s726_s10   ;;  %s124_s13 = ssub.s32 128, %s462_s6 }
  0x4b   :  { %98 = vrot.lane.b32.xlu0 %v90_v8, %s96_s12  ;;  %s728_s13 = smov (%p123_p10, %s124_s13), 0  ;;  %p113_p11 = scmp.eq.s32.totalorder %s461_s2, 0 }
  0x4c   :  { %s114_s14 = ssub.s32 128, %s461_s2  ;;  %s126_s15 = sand.u32 127, %s728_s13  }
  0x4d   :  { %p235_p12 = scmp.eq.s32.totalorder %s472_s7, 0  ;;  %s730_s14 = smov (%p113_p11, %s114_s14), 0 }
  0x4e   :  { %128 = vrot.lane.b32.xlu1 %v90_v8, %s126_s15  ;;  %s236_s16 = ssub.s32 128, %s472_s7  ;;  %p225_p13 = scmp.eq.s32.totalorder %s471_s8, 0 }
  0x4f   :  { %s116_s17 = sand.u32 127, %s730_s14   ;;  %s226_s18 = ssub.s32 128, %s471_s8 }
  0x50   :  { %118 = vrot.lane.b32.xlu0 %v90_v8, %s116_s17  ;;  %s732_s16 = smov (%p235_p12, %s236_s16), 0  ;;  %s734_s18 = smov (%p225_p13, %s226_s18), 0 }
  0x51   :  { %s238_s19 = sand.u32 127, %s732_s16   ;;  %s474_s20 = sld [smem:[#allocation4 + $0x13]] }
  0x52   :  { %240 = vrot.lane.b32.xlu1 %v222_v9, %s238_s19  ;;  %s228_s0 = sand.u32 127, %s734_s18   ;;  %s473_s21 = sld [smem:[#allocation4 + $0x12]] }
  0x53   :  { %s476_s22 = sld [smem:[#allocation4 + $0x15]]  ;;  %s589_s9 = smov 64  }
  0x54   :  { %230 = vrot.lane.b32.xlu0 %v222_v9, %s228_s0  ;;  %s475_s23 = sld [smem:[#allocation4 + $0x14]] }
  0x55   :  { %s478_s24 = sld [smem:[#allocation4 + $0x17]] }
  0x56   :  { %s477_s25 = sld [smem:[#allocation4 + $0x16]] }
  0x57   :  { %p255_p0 = scmp.eq.s32.totalorder %s474_s20, 0  ;;  %s256_s26 = ssub.s32 128, %s474_s20 }
  0x58   :  { %p245_p1 = scmp.eq.s32.totalorder %s473_s21, 0  ;;  %s246_s27 = ssub.s32 128, %s473_s21 }
  0x59   :  { %s736_s26 = smov (%p255_p0, %s256_s26), 0  ;;  %p279_p2 = scmp.eq.s32.totalorder %s476_s22, 0 }
  0x5a   :  { %s738_s27 = smov (%p245_p1, %s246_s27), 0  ;;  %s258_s1 = sand.u32 127, %s736_s26  }
  0x5b   :  { %260 = vrot.lane.b32.xlu1 %v222_v9, %s258_s1  ;;  %s248_s28 = sand.u32 127, %s738_s27   ;;  %s280_s29 = ssub.s32 128, %s476_s22 }
  0x5c   :  { %250 = vrot.lane.b32.xlu0 %v222_v9, %s248_s28  ;;  %s740_s29 = smov (%p279_p2, %s280_s29), 0  ;;  %p269_p3 = scmp.eq.s32.totalorder %s475_s23, 0 }
  0x5d   :  { %s270_s30 = ssub.s32 128, %s475_s23  ;;  %s282_s4 = sand.u32 127, %s740_s29  }
  0x5e   :  { %p299_p4 = scmp.eq.s32.totalorder %s478_s24, 0  ;;  %s742_s30 = smov (%p269_p3, %s270_s30), 0 }
  0x5f   :  { %284 = vrot.lane.b32.xlu1 %v266_v10, %s282_s4  ;;  %s300_s5 = ssub.s32 128, %s478_s24  ;;  %p289_p5 = scmp.eq.s32.totalorder %s477_s25, 0 }
  0x60   :  { %s272_s6 = sand.u32 127, %s742_s30   ;;  %s290_s2 = ssub.s32 128, %s477_s25 }
  0x61   :  { %274 = vrot.lane.b32.xlu0 %v266_v10, %s272_s6  ;;  %s744_s5 = smov (%p299_p4, %s300_s5), 0  ;;  %s746_s2 = smov (%p289_p5, %s290_s2), 0 }
  0x62   :  { %s302_s7 = sand.u32 127, %s744_s5   ;;  %s292_s8 = sand.u32 127, %s746_s2  }
  0x63   :  { %304 = vrot.lane.b32.xlu1 %v266_v10, %s302_s7 }
  0x65   :  { %294 = vrot.lane.b32.xlu0 %v266_v10, %s292_s8 }
  0x9a   :  { %v163_v11 = vpop.permute.xlu1 %162 }
  0x9b   :  { %164 = vst.msk [vmem:[#allocation2 + $0xa] sm:$0x1] %vm55_vm1, %v163_v11  ;;  %v143_v12 = vpop.permute.xlu0 %142 }
  0x9c   :  { %144 = vst.msk [vmem:[#allocation2 + $0x8] sm:$0x1] %vm55_vm1, %v143_v12 }
  0x9e   :  { %v173_v13 = vpop.permute.xlu1 %172 }
  0x9f   :  { %174 = vst.msk [vmem:[#allocation2 + $0xb] sm:$0x1] %vm55_vm1, %v173_v13 }
  0xa0   :  { %v153_v14 = vpop.permute.xlu0 %152 }
  0xa1   :  { %154 = vst.msk [vmem:[#allocation2 + $0x9] sm:$0x1] %vm55_vm1, %v153_v14 }
  0xa2   :  { %v197_v15 = vpop.permute.xlu1 %196 }
  0xa3   :  { %198 = vst.msk [vmem:[#allocation2 + $0xd] sm:$0x1] %vm55_vm1, %v197_v15 }
  0xa4   :  { %v187_v16 = vpop.permute.xlu0 %186 }
  0xa5   :  { %188 = vst.msk [vmem:[#allocation2 + $0xc] sm:$0x1] %vm55_vm1, %v187_v16 }
  0xab   :  { %v217_v17 = vpop.permute.xlu1 %216 }
  0xac   :  { %218 = vst.msk [vmem:[#allocation2 + $0xf] sm:$0x1] %vm55_vm1, %v217_v17  ;;  %v207_v18 = vpop.permute.xlu0 %206 }
  0xad   :  { %208 = vst.msk [vmem:[#allocation2 + $0xe] sm:$0x1] %vm55_vm1, %v207_v18 }
  0xaf   :  { %v65_v19 = vpop.permute.xlu1 %64 }
  0xb0   :  { %66 = vst.msk [vmem:[#allocation2 + $0x1] sm:$0x1] %vm55_vm1, %v65_v19 }
  0xb1   :  { %v54_v20 = vpop.permute.xlu0 %53 }
  0xb2   :  { %56 = vst.msk [vmem:[#allocation2] sm:$0x1] %vm55_vm1, %v54_v20 }
  0xb3   :  { %v85_v22 = vpop.permute.xlu1 %84 }
  0xb4   :  { %v308_v21 = vld [vmem:[#allocation2 + $0x8] sm:$0xff]  ;;  %86 = vst.msk [vmem:[#allocation2 + $0x3] sm:$0x1] %vm55_vm1, %v85_v22 }
  0xb5   :  { %501 = vmatmul.mubr.msk.f32.vlgmr.msra.gmra.mxu1 %vm314_vm2, %v308_v21  ;;  %v75_v23 = vpop.permute.xlu0 %74 }
  0xb6   :  { %503 = vmatprep.mubr.msk.f32.mxu1 %vm588_vm0, %v587_v3  ;;  %76 = vst.msk [vmem:[#allocation2 + $0x2] sm:$0x1] %vm55_vm1, %v75_v23 }
  0xbc   :  { %v109_v24 = vpop.permute.xlu1 %108 }
  0xbd   :  { %110 = vst.msk [vmem:[#allocation2 + $0x5] sm:$0x1] %vm55_vm1, %v109_v24  ;;  %v99_v25 = vpop.permute.xlu0 %98 }
  0xbe   :  { %100 = vst.msk [vmem:[#allocation2 + $0x4] sm:$0x1] %vm55_vm1, %v99_v25 }
  0xc0   :  { %v129_v26 = vpop.permute.xlu1 %128 }
  0xc1   :  { %130 = vst.msk [vmem:[#allocation2 + $0x7] sm:$0x1] %vm55_vm1, %v129_v26 }
  0xc2   :  { %v119_v27 = vpop.permute.xlu0 %118 }
  0xc3   :  { %120 = vst.msk [vmem:[#allocation2 + $0x6] sm:$0x1] %vm55_vm1, %v119_v27 }
  0xc4   :  { %v241_v28 = vpop.permute.xlu1 %240 }
  0xc5   :  { %242 = vst.msk [vmem:[#allocation2 + $0x11] sm:$0x1] %vm55_vm1, %v241_v28 }
  0xc6   :  { %v231_v29 = vpop.permute.xlu0 %230 }
  0xc7   :  { %232 = vst.msk [vmem:[#allocation2 + $0x10] sm:$0x1] %vm55_vm1, %v231_v29 }
  0xca   :  { %v307_v30 = vld [vmem:[#allocation2] sm:$0xff] }
  0xcb   :  { %498 = vmatmul.mubr.msk.f32.vlgmr.msra.gmra.mxu0 %vm314_vm2, %v307_v30 }
  0xcd   :  { %v261_v31 = vpop.permute.xlu1 %260 }
  0xce   :  { %262 = vst.msk [vmem:[#allocation2 + $0x13] sm:$0x1] %vm55_vm1, %v261_v31  ;;  %v251_v32 = vpop.permute.xlu0 %250 }
  0xcf   :  { %252 = vst.msk [vmem:[#allocation2 + $0x12] sm:$0x1] %vm55_vm1, %v251_v32 }
  0xd1   :  { %v285_v33 = vpop.permute.xlu1 %284 }
  0xd2   :  { %286 = vst.msk [vmem:[#allocation2 + $0x15] sm:$0x1] %vm55_vm1, %v285_v33 }
  0xd3   :  { %v275_v34 = vpop.permute.xlu0 %274 }
  0xd4   :  { %276 = vst.msk [vmem:[#allocation2 + $0x14] sm:$0x1] %vm55_vm1, %v275_v34 }
  0xd5   :  { %v305_v35 = vpop.permute.xlu1 %304 }
  0xd6   :  { %306 = vst.msk [vmem:[#allocation2 + $0x17] sm:$0x1] %vm55_vm1, %v305_v35 }
  0xd7   :  { %v295_v36 = vpop.permute.xlu0 %294 }
  0xd8   :  { %296 = vst.msk [vmem:[#allocation2 + $0x16] sm:$0x1] %vm55_vm1, %v295_v36 }
  0xdf   :  { %v309_v37 = vld [vmem:[#allocation2 + $0x10] sm:$0xff] }
  0xe0   :  { %504 = vmatmul.mubr.msk.f32.gmra.mxu1 %vm314_vm2, %v309_v37 }
 0x175   :  { %v395_v38 = vpop.f32.mrf.mxu1 }
 0x176   :  { %v405_v39 = vmul.f32 %v395_v38, %v395_v38 }
 0x177   :  { %v502_v40 = vpop.f32.mrf.mxu1 }
 0x178   :  { %412 = vrot.lane.b32.xlu1 %v405_v39, %s589_s9 }
 0x18b   :  { %v390_v41 = vpop.f32.mrf.mxu0 }
 0x18c   :  { %v404_v42 = vmul.f32 %v390_v41, %v390_v41 }
 0x18d   :  { %v499_v43 = vpop.f32.mrf.mxu0 }
 0x18e   :  { %410 = vrot.lane.b32.xlu0 %v404_v42, %s589_s9 }
 0x1a0   :  { %v400_v44 = vpop.f32.mrf.mxu1 }
 0x1a1   :  { %v406_v45 = vmul.f32 %v400_v44, %v400_v44 }
 0x1a2   :  { %v505_v46 = vpop.f32.mrf.mxu1 }
 0x1a3   :  { %414 = vrot.lane.b32.xlu0 %v406_v45, %s589_s9 }
 0x1ea   :  { %v413_v47 = vpop.permute.xlu1 %412 }
 0x1eb   :  { %v420_v48 = vadd.f32 %v413_v47, %v405_v39 }
 0x1ed   :  { %v426_v49 = vsel %vm422_vm3, %v420_v48, 0.0 }
 0x1ee   :  { %427 = vadd.xlane.f32.xlu0 %v426_v49 }
 0x200   :  { %v411_v50 = vpop.permute.xlu0 %410 }
 0x201   :  { %v419_v51 = vadd.f32 %v411_v50, %v404_v42 }
 0x203   :  { %v423_v52 = vsel %vm422_vm3, %v419_v51, 0.0 }
 0x204   :  { %424 = vadd.xlane.f32.xlu1 %v423_v52 }
 0x215   :  { %v415_v53 = vpop.permute.xlu0 %414 }
 0x216   :  { %v421_v54 = vadd.f32 %v415_v53, %v406_v45 }
 0x218   :  { %v429_v55 = vsel %vm422_vm3, %v421_v54, 0.0 }
 0x219   :  { %430 = vadd.xlane.f32.xlu0 %v429_v55 }
 0x277   :  { %v428_v56 = vpop.xlane.xlu0 %427 }
 0x278   :  { %522 = vrcp.f32 %v428_v56 }
 0x285   :  { %v523_v57 = vpop.eup %522 }
 0x286   :  { %v436_v58 = vmul.f32 %v523_v57, %v428_v56 }
 0x288   :  { %v439_v59 = vsub.f32 2.0, %v436_v58 }
 0x28a   :  { %v442_v60 = vmul.f32 %v523_v57, %v439_v59 }
 0x28c   :  { %v445_v61 = vmul.f32 %v442_v60, %v420_v48 }
 0x28d   :  { %v425_v62 = vpop.xlane.xlu1 %424 }
 0x28e   :  { %448 = vst.msk [vmem:[%s698_s3 + $0x8] sm:$0xff] %vm422_vm3, %v445_v61  ;;  %524 = vrcp.f32 %v425_v62 }
 0x29b   :  { %v525_v63 = vpop.eup %524 }
 0x29c   :  { %v435_v0 = vmul.f32 %v525_v63, %v425_v62 }
 0x29e   :  { %v438_v1 = vsub.f32 2.0, %v435_v0 }
 0x2a0   :  { %v441_v2 = vmul.f32 %v525_v63, %v438_v1 }
 0x2a2   :  { %v444_v3 = vmul.f32 %v441_v2, %v419_v51  ;;  %v431_v4 = vpop.xlane.xlu0 %430 }
 0x2a3   :  { %526 = vrcp.f32 %v431_v4 }
 0x2a4   :  { %447 = vst.msk [vmem:[%s698_s3] sm:$0xff] %vm422_vm3, %v444_v3 }
 0x2b0   :  { %v527_v5 = vpop.eup %526 }
 0x2b1   :  { %v437_v6 = vmul.f32 %v527_v5, %v431_v4 }
 0x2b3   :  { %v440_v7 = vsub.f32 2.0, %v437_v6 }
 0x2b5   :  { %v443_v8 = vmul.f32 %v527_v5, %v440_v7 }
 0x2b7   :  { %v446_v9 = vmul.f32 %v443_v8, %v421_v54 }
 0x2b9   :  { %449 = vst.msk [vmem:[%s698_s3 + $0x10] sm:$0xff] %vm422_vm3, %v446_v9 }
 0x2ba   :  { %454 = vsyncpa [#allocation6], 1 }
 0x2bb   :  { %455 = vsyncpa [#allocation8], 1 }

</bundles_post_ra>
